<compile_context>
chip_gen: v7x
topology: tpu7x:2x2x1
jax: 0.10.0
libtpu: 0.0.40
codegen_flags: <defaults>
</compile_context>

<pallas_src>
import jax
import jax.numpy as jnp
from jax import lax
from jax.experimental import pallas as pl
from jax.experimental.pallas import tpu as pltpu


def _pos_embed_kernel(col_ref, row_ref, o_ref):
    # col_ref: (F, D)        full col_embed table (resident, single-buffered)
    # row_ref: (TA, D)       this grid step's chunk of the row_embed table
    # o_ref:   (TA, F, 2D)   this grid step's output tile
    ta, f, two_d = o_ref.shape
    d = col_ref.shape[1]
    aligned = (d % 128 == 0)

    col = col_ref[...]                                    # (F, D)

    def body(a, carry):
        # Sublane-broadcast of row[a] to all F positions of axis `b`.
        row_a = jnp.broadcast_to(row_ref[pl.ds(a, 1), :], (f, d))   # (F, D)
        if aligned:
            # Two 128-aligned, unmasked lane-slice stores.
            o_ref[pl.ds(a, 1), :, :d] = col[None, :, :]
            o_ref[pl.ds(a, 1), :, d:] = row_a[None, :, :]
        else:
            # Non-128-aligned split: one full-width store of the concat.
            o_ref[pl.ds(a, 1), :, :] = jnp.concatenate(
                [col, row_a], axis=-1)[None, :, :]
        return carry

    unroll = True if ta <= 32 else 8
    lax.fori_loop(0, ta, body, 0, unroll=unroll)


def _pick_block_rows(feature_size, bytes_per_outer_row):
    """Choose TA (rows of the outer `a` axis per grid step).

    Tiny outputs: one step (launch overhead dominates).  Larger outputs:
    multi-MiB tiles capped at 8 MiB per buffer (v7x-safe when double
    buffered) and at least 2 grid steps so both v7x TensorCores get work.
    """
    total = feature_size * bytes_per_outer_row
    if total <= (2 << 20):
        return feature_size
    budget = 8 << 20
    ta = max(8, (budget // bytes_per_outer_row) // 8 * 8)
    half = max(8, (((feature_size + 1) // 2) + 7) // 8 * 8)   # >=2 grid steps
    ta = min(ta, half, feature_size)
    return int(ta)


def position_embedding_learned(col_weight, row_weight, block_rows=None):
    """Forward of PositionEmbeddingLearned.

    col_weight, row_weight: (feature_size, num_pos_feats) embedding tables.
    Returns pos of shape (feature_size**2, 2 * num_pos_feats).
    """
    F, D = col_weight.shape
    assert row_weight.shape == (F, D)
    dtype = col_weight.dtype
    itemsize = jnp.dtype(dtype).itemsize
    row_bytes = F * 2 * D * itemsize          # output bytes per outer row `a`

    if block_rows is None:
        block_rows = _pick_block_rows(F, row_bytes)
    assert block_rows == F or block_rows % 8 == 0, (
        "block_rows must equal feature_size or be a multiple of 8")
    TA = min(block_rows, F)
    grid = pl.cdiv(F, TA)                     # ragged last block is fine

    # VMEM footprint: 2x output tile (double-buffered) + 1x col table
    # (single-buffered) + 2x row chunk, plus slack.
    out_tile_bytes = TA * row_bytes
    col_bytes = F * D * itemsize
    row_tile_bytes = TA * D * itemsize
    vmem_need = 2 * out_tile_bytes + col_bytes + 2 * row_tile_bytes
    vmem_limit = int(min(max(vmem_need + (4 << 20), 16 << 20), 48 << 20))

    out3d = pl.pallas_call(
        _pos_embed_kernel,
        out_shape=jax.ShapeDtypeStruct((F, F, 2 * D), dtype),
        grid_spec=pltpu.PrefetchScalarGridSpec(
            num_scalar_prefetch=0,
            grid=(grid,),
            in_specs=[
                # Full col_embed table; block index constant across the grid
                # => keep a single buffer.
                pl.BlockSpec((F, D), lambda t: (0, 0),
                             pipeline_mode=pl.Buffered(1)),
                # This step's chunk of row_embed.
                pl.BlockSpec((TA, D), lambda t: (t, 0)),
            ],
            out_specs=pl.BlockSpec((TA, F, 2 * D), lambda t: (t, 0, 0)),
        ),
        compiler_params=pltpu.CompilerParams(
            dimension_semantics=("parallel",),
            vmem_limit_bytes=vmem_limit,
        ),
    )(col_weight, row_weight)

    return out3d.reshape(F * F, 2 * D)


def _reference(col_w, row_w):
    F, D = col_w.shape
    return jnp.concatenate(
        [
            jnp.broadcast_to(col_w[None, :, :], (F, F, D)),   # x_emb over rows
            jnp.broadcast_to(row_w[:, None, :], (F, F, D)),   # y_emb over cols
        ],
        axis=-1,
    ).reshape(F * F, 2 * D)


if __name__ == "__main__":
    key = jax.random.PRNGKey(0)
    k_col, k_row, k_col2, k_row2 = jax.random.split(key, 4)

    # Default module configuration: feature_size=16, num_pos_feats=128.
    feature_size = 16
    num_pos_feats = 128

    # nn.init.uniform_ on the embedding weights -> U[0, 1)
    col_w = jax.random.uniform(k_col, (feature_size, num_pos_feats),
                               dtype=jnp.float32)
    row_w = jax.random.uniform(k_row, (feature_size, num_pos_feats),
                               dtype=jnp.float32)

    # Default path (tiny output => single grid step).
    pos = jax.block_until_ready(position_embedding_learned(col_w, row_w))
    # Blocked path (grid=2, megacore-style split).
    pos_blocked = jax.block_until_ready(
        position_embedding_learned(col_w, row_w, block_rows=8))

    ref = _reference(col_w, row_w)
    assert pos.shape == (feature_size * feature_size, 2 * num_pos_feats)
    assert pos.dtype == jnp.float32
    assert jnp.allclose(pos, ref), "kernel output mismatch vs reference"
    assert jnp.allclose(pos_blocked, ref), "blocked output mismatch vs reference"

    # Ragged-grid path: F=20 is not a multiple of block_rows=8 -> grid=3 with
    # a partially-valid last block (exercise the pl.cdiv / ragged handling).
    F2 = 20
    col_w2 = jax.random.uniform(k_col2, (F2, num_pos_feats), dtype=jnp.float32)
    row_w2 = jax.random.uniform(k_row2, (F2, num_pos_feats), dtype=jnp.float32)
    pos_ragged = jax.block_until_ready(
        position_embedding_learned(col_w2, row_w2, block_rows=8))
    assert jnp.allclose(pos_ragged, _reference(col_w2, row_w2)), (
        "ragged output mismatch vs reference")

    print("KERNEL_OK")
</pallas_src>

<mosaic_0001>
module attributes {stable_mosaic.version = 11 : i64} {
  func.func @_pos_embed_kernel(%arg0: i32, %arg1: memref<16x128xf32, #tpu.memory_space<vmem>>, %arg2: memref<16x128xf32, #tpu.memory_space<vmem>>, %arg3: memref<16x16x256xf32, #tpu.memory_space<vmem>>) attributes {dimension_semantics = [#tpu.dimension_semantics<parallel>], iteration_bounds = array<i64: 1>, scalar_prefetch = 0 : i64, scratch_operands = 0 : i64, tpu.core_type = #tpu.core_type<tc>, window_params = [{pipeline_mode = #tpu.pipeline_mode<synchronous>, transform_indices = @transform_0, window_bounds = array<i64: 16, 128>}, {transform_indices = @transform_1, window_bounds = array<i64: 16, 128>}, {transform_indices = @transform_2, window_bounds = array<i64: 16, 16, 256>}]} {
    %c0 = arith.constant 0 : index
    %c0_0 = arith.constant 0 : index
    %0 = vector.load %arg1[%c0, %c0_0] : memref<16x128xf32, #tpu.memory_space<vmem>>, vector<16x128xf32>
    %c0_i32 = arith.constant 0 : i32
    %1 = arith.index_cast %c0_i32 : i32 to index
    %c0_1 = arith.constant 0 : index
    %2 = vector.load %arg2[%1, %c0_1] : memref<16x128xf32, #tpu.memory_space<vmem>>, vector<1x128xf32>
    %3 = vector.shape_cast %2 : vector<1x128xf32> to vector<1x128xf32>
    %4 = vector.broadcast %3 : vector<1x128xf32> to vector<16x128xf32>
    %5 = vector.shape_cast %0 : vector<16x128xf32> to vector<1x16x128xf32>
    %6 = arith.index_cast %c0_i32 : i32 to index
    %c0_2 = arith.constant 0 : index
    %c0_3 = arith.constant 0 : index
    %7 = vector.load %arg3[%6, %c0_2, %c0_3] : memref<16x16x256xf32, #tpu.memory_space<vmem>>, vector<1x16x128xf32>
    tpu.vector_store %arg3[%6, %c0_2, %c0_3], %5 {strides = array<i32>} : memref<16x16x256xf32, #tpu.memory_space<vmem>>, vector<1x16x128xf32>,
    %8 = vector.shape_cast %4 : vector<16x128xf32> to vector<1x16x128xf32>
    %9 = arith.index_cast %c0_i32 : i32 to index
    %c0_4 = arith.constant 0 : index
    %c128 = arith.constant 128 : index
    %10 = vector.load %arg3[%9, %c0_4, %c128] : memref<16x16x256xf32, #tpu.memory_space<vmem>>, vector<1x16x128xf32>
    tpu.vector_store %arg3[%9, %c0_4, %c128], %8 {strides = array<i32>} : memref<16x16x256xf32, #tpu.memory_space<vmem>>, vector<1x16x128xf32>,
    %c1_i32 = arith.constant 1 : i32
    %11 = arith.index_cast %c1_i32 : i32 to index
    %c0_5 = arith.constant 0 : index
    %12 = vector.load %arg2[%11, %c0_5] : memref<16x128xf32, #tpu.memory_space<vmem>>, vector<1x128xf32>
    %13 = vector.shape_cast %12 : vector<1x128xf32> to vector<1x128xf32>
    %14 = vector.broadcast %13 : vector<1x128xf32> to vector<16x128xf32>
    %15 = vector.shape_cast %0 : vector<16x128xf32> to vector<1x16x128xf32>
    %16 = arith.index_cast %c1_i32 : i32 to index
    %c0_6 = arith.constant 0 : index
    %c0_7 = arith.constant 0 : index
    %17 = vector.load %arg3[%16, %c0_6, %c0_7] : memref<16x16x256xf32, #tpu.memory_space<vmem>>, vector<1x16x128xf32>
    tpu.vector_store %arg3[%16, %c0_6, %c0_7], %15 {strides = array<i32>} : memref<16x16x256xf32, #tpu.memory_space<vmem>>, vector<1x16x128xf32>,
    %18 = vector.shape_cast %14 : vector<16x128xf32> to vector<1x16x128xf32>
    %19 = arith.index_cast %c1_i32 : i32 to index
    %c0_8 = arith.constant 0 : index
    %c128_9 = arith.constant 128 : index
    %20 = vector.load %arg3[%19, %c0_8, %c128_9] : memref<16x16x256xf32, #tpu.memory_space<vmem>>, vector<1x16x128xf32>
    tpu.vector_store %arg3[%19, %c0_8, %c128_9], %18 {strides = array<i32>} : memref<16x16x256xf32, #tpu.memory_space<vmem>>, vector<1x16x128xf32>,
    %c2_i32 = arith.constant 2 : i32
    %21 = arith.index_cast %c2_i32 : i32 to index
    %c0_10 = arith.constant 0 : index
    %22 = vector.load %arg2[%21, %c0_10] : memref<16x128xf32, #tpu.memory_space<vmem>>, vector<1x128xf32>
    %23 = vector.shape_cast %22 : vector<1x128xf32> to vector<1x128xf32>
    %24 = vector.broadcast %23 : vector<1x128xf32> to vector<16x128xf32>
    %25 = vector.shape_cast %0 : vector<16x128xf32> to vector<1x16x128xf32>
    %26 = arith.index_cast %c2_i32 : i32 to index
    %c0_11 = arith.constant 0 : index
    %c0_12 = arith.constant 0 : index
    %27 = vector.load %arg3[%26, %c0_11, %c0_12] : memref<16x16x256xf32, #tpu.memory_space<vmem>>, vector<1x16x128xf32>
    tpu.vector_store %arg3[%26, %c0_11, %c0_12], %25 {strides = array<i32>} : memref<16x16x256xf32, #tpu.memory_space<vmem>>, vector<1x16x128xf32>,
    %28 = vector.shape_cast %24 : vector<16x128xf32> to vector<1x16x128xf32>
    %29 = arith.index_cast %c2_i32 : i32 to index
    %c0_13 = arith.constant 0 : index
    %c128_14 = arith.constant 128 : index
    %30 = vector.load %arg3[%29, %c0_13, %c128_14] : memref<16x16x256xf32, #tpu.memory_space<vmem>>, vector<1x16x128xf32>
    tpu.vector_store %arg3[%29, %c0_13, %c128_14], %28 {strides = array<i32>} : memref<16x16x256xf32, #tpu.memory_space<vmem>>, vector<1x16x128xf32>,
    %c3_i32 = arith.constant 3 : i32
    %31 = arith.index_cast %c3_i32 : i32 to index
    %c0_15 = arith.constant 0 : index
    %32 = vector.load %arg2[%31, %c0_15] : memref<16x128xf32, #tpu.memory_space<vmem>>, vector<1x128xf32>
    %33 = vector.shape_cast %32 : vector<1x128xf32> to vector<1x128xf32>
    %34 = vector.broadcast %33 : vector<1x128xf32> to vector<16x128xf32>
    %35 = vector.shape_cast %0 : vector<16x128xf32> to vector<1x16x128xf32>
    %36 = arith.index_cast %c3_i32 : i32 to index
    %c0_16 = arith.constant 0 : index
    %c0_17 = arith.constant 0 : index
    %37 = vector.load %arg3[%36, %c0_16, %c0_17] : memref<16x16x256xf32, #tpu.memory_space<vmem>>, vector<1x16x128xf32>
    tpu.vector_store %arg3[%36, %c0_16, %c0_17], %35 {strides = array<i32>} : memref<16x16x256xf32, #tpu.memory_space<vmem>>, vector<1x16x128xf32>,
    %38 = vector.shape_cast %34 : vector<16x128xf32> to vector<1x16x128xf32>
    %39 = arith.index_cast %c3_i32 : i32 to index
    %c0_18 = arith.constant 0 : index
    %c128_19 = arith.constant 128 : index
    %40 = vector.load %arg3[%39, %c0_18, %c128_19] : memref<16x16x256xf32, #tpu.memory_space<vmem>>, vector<1x16x128xf32>
    tpu.vector_store %arg3[%39, %c0_18, %c128_19], %38 {strides = array<i32>} : memref<16x16x256xf32, #tpu.memory_space<vmem>>, vector<1x16x128xf32>,
    %c4_i32 = arith.constant 4 : i32
    %41 = arith.index_cast %c4_i32 : i32 to index
    %c0_20 = arith.constant 0 : index
    %42 = vector.load %arg2[%41, %c0_20] : memref<16x128xf32, #tpu.memory_space<vmem>>, vector<1x128xf32>
    %43 = vector.shape_cast %42 : vector<1x128xf32> to vector<1x128xf32>
    %44 = vector.broadcast %43 : vector<1x128xf32> to vector<16x128xf32>
    %45 = vector.shape_cast %0 : vector<16x128xf32> to vector<1x16x128xf32>
    %46 = arith.index_cast %c4_i32 : i32 to index
    %c0_21 = arith.constant 0 : index
    %c0_22 = arith.constant 0 : index
    %47 = vector.load %arg3[%46, %c0_21, %c0_22] : memref<16x16x256xf32, #tpu.memory_space<vmem>>, vector<1x16x128xf32>
    tpu.vector_store %arg3[%46, %c0_21, %c0_22], %45 {strides = array<i32>} : memref<16x16x256xf32, #tpu.memory_space<vmem>>, vector<1x16x128xf32>,
    %48 = vector.shape_cast %44 : vector<16x128xf32> to vector<1x16x128xf32>
    %49 = arith.index_cast %c4_i32 : i32 to index
    %c0_23 = arith.constant 0 : index
    %c128_24 = arith.constant 128 : index
    %50 = vector.load %arg3[%49, %c0_23, %c128_24] : memref<16x16x256xf32, #tpu.memory_space<vmem>>, vector<1x16x128xf32>
    tpu.vector_store %arg3[%49, %c0_23, %c128_24], %48 {strides = array<i32>} : memref<16x16x256xf32, #tpu.memory_space<vmem>>, vector<1x16x128xf32>,
    %c5_i32 = arith.constant 5 : i32
    %51 = arith.index_cast %c5_i32 : i32 to index
    %c0_25 = arith.constant 0 : index
    %52 = vector.load %arg2[%51, %c0_25] : memref<16x128xf32, #tpu.memory_space<vmem>>, vector<1x128xf32>
    %53 = vector.shape_cast %52 : vector<1x128xf32> to vector<1x128xf32>
    %54 = vector.broadcast %53 : vector<1x128xf32> to vector<16x128xf32>
    %55 = vector.shape_cast %0 : vector<16x128xf32> to vector<1x16x128xf32>
    %56 = arith.index_cast %c5_i32 : i32 to index
    %c0_26 = arith.constant 0 : index
    %c0_27 = arith.constant 0 : index
    %57 = vector.load %arg3[%56, %c0_26, %c0_27] : memref<16x16x256xf32, #tpu.memory_space<vmem>>, vector<1x16x128xf32>
    tpu.vector_store %arg3[%56, %c0_26, %c0_27], %55 {strides = array<i32>} : memref<16x16x256xf32, #tpu.memory_space<vmem>>, vector<1x16x128xf32>,
    %58 = vector.shape_cast %54 : vector<16x128xf32> to vector<1x16x128xf32>
    %59 = arith.index_cast %c5_i32 : i32 to index
    %c0_28 = arith.constant 0 : index
    %c128_29 = arith.constant 128 : index
    %60 = vector.load %arg3[%59, %c0_28, %c128_29] : memref<16x16x256xf32, #tpu.memory_space<vmem>>, vector<1x16x128xf32>
    tpu.vector_store %arg3[%59, %c0_28, %c128_29], %58 {strides = array<i32>} : memref<16x16x256xf32, #tpu.memory_space<vmem>>, vector<1x16x128xf32>,
    %c6_i32 = arith.constant 6 : i32
    %61 = arith.index_cast %c6_i32 : i32 to index
    %c0_30 = arith.constant 0 : index
    %62 = vector.load %arg2[%61, %c0_30] : memref<16x128xf32, #tpu.memory_space<vmem>>, vector<1x128xf32>
    %63 = vector.shape_cast %62 : vector<1x128xf32> to vector<1x128xf32>
    %64 = vector.broadcast %63 : vector<1x128xf32> to vector<16x128xf32>
    %65 = vector.shape_cast %0 : vector<16x128xf32> to vector<1x16x128xf32>
    %66 = arith.index_cast %c6_i32 : i32 to index
    %c0_31 = arith.constant 0 : index
    %c0_32 = arith.constant 0 : index
    %67 = vector.load %arg3[%66, %c0_31, %c0_32] : memref<16x16x256xf32, #tpu.memory_space<vmem>>, vector<1x16x128xf32>
    tpu.vector_store %arg3[%66, %c0_31, %c0_32], %65 {strides = array<i32>} : memref<16x16x256xf32, #tpu.memory_space<vmem>>, vector<1x16x128xf32>,
    %68 = vector.shape_cast %64 : vector<16x128xf32> to vector<1x16x128xf32>
    %69 = arith.index_cast %c6_i32 : i32 to index
    %c0_33 = arith.constant 0 : index
    %c128_34 = arith.constant 128 : index
    %70 = vector.load %arg3[%69, %c0_33, %c128_34] : memref<16x16x256xf32, #tpu.memory_space<vmem>>, vector<1x16x128xf32>
    tpu.vector_store %arg3[%69, %c0_33, %c128_34], %68 {strides = array<i32>} : memref<16x16x256xf32, #tpu.memory_space<vmem>>, vector<1x16x128xf32>,
    %c7_i32 = arith.constant 7 : i32
    %71 = arith.index_cast %c7_i32 : i32 to index
    %c0_35 = arith.constant 0 : index
    %72 = vector.load %arg2[%71, %c0_35] : memref<16x128xf32, #tpu.memory_space<vmem>>, vector<1x128xf32>
    %73 = vector.shape_cast %72 : vector<1x128xf32> to vector<1x128xf32>
    %74 = vector.broadcast %73 : vector<1x128xf32> to vector<16x128xf32>
    %75 = vector.shape_cast %0 : vector<16x128xf32> to vector<1x16x128xf32>
    %76 = arith.index_cast %c7_i32 : i32 to index
    %c0_36 = arith.constant 0 : index
    %c0_37 = arith.constant 0 : index
    %77 = vector.load %arg3[%76, %c0_36, %c0_37] : memref<16x16x256xf32, #tpu.memory_space<vmem>>, vector<1x16x128xf32>
    tpu.vector_store %arg3[%76, %c0_36, %c0_37], %75 {strides = array<i32>} : memref<16x16x256xf32, #tpu.memory_space<vmem>>, vector<1x16x128xf32>,
    %78 = vector.shape_cast %74 : vector<16x128xf32> to vector<1x16x128xf32>
    %79 = arith.index_cast %c7_i32 : i32 to index
    %c0_38 = arith.constant 0 : index
    %c128_39 = arith.constant 128 : index
    %80 = vector.load %arg3[%79, %c0_38, %c128_39] : memref<16x16x256xf32, #tpu.memory_space<vmem>>, vector<1x16x128xf32>
    tpu.vector_store %arg3[%79, %c0_38, %c128_39], %78 {strides = array<i32>} : memref<16x16x256xf32, #tpu.memory_space<vmem>>, vector<1x16x128xf32>,
    %c8_i32 = arith.constant 8 : i32
    %81 = arith.index_cast %c8_i32 : i32 to index
    %c0_40 = arith.constant 0 : index
    %82 = vector.load %arg2[%81, %c0_40] : memref<16x128xf32, #tpu.memory_space<vmem>>, vector<1x128xf32>
    %83 = vector.shape_cast %82 : vector<1x128xf32> to vector<1x128xf32>
    %84 = vector.broadcast %83 : vector<1x128xf32> to vector<16x128xf32>
    %85 = vector.shape_cast %0 : vector<16x128xf32> to vector<1x16x128xf32>
    %86 = arith.index_cast %c8_i32 : i32 to index
    %c0_41 = arith.constant 0 : index
    %c0_42 = arith.constant 0 : index
    %87 = vector.load %arg3[%86, %c0_41, %c0_42] : memref<16x16x256xf32, #tpu.memory_space<vmem>>, vector<1x16x128xf32>
    tpu.vector_store %arg3[%86, %c0_41, %c0_42], %85 {strides = array<i32>} : memref<16x16x256xf32, #tpu.memory_space<vmem>>, vector<1x16x128xf32>,
    %88 = vector.shape_cast %84 : vector<16x128xf32> to vector<1x16x128xf32>
    %89 = arith.index_cast %c8_i32 : i32 to index
    %c0_43 = arith.constant 0 : index
    %c128_44 = arith.constant 128 : index
    %90 = vector.load %arg3[%89, %c0_43, %c128_44] : memref<16x16x256xf32, #tpu.memory_space<vmem>>, vector<1x16x128xf32>
    tpu.vector_store %arg3[%89, %c0_43, %c128_44], %88 {strides = array<i32>} : memref<16x16x256xf32, #tpu.memory_space<vmem>>, vector<1x16x128xf32>,
    %c9_i32 = arith.constant 9 : i32
    %91 = arith.index_cast %c9_i32 : i32 to index
    %c0_45 = arith.constant 0 : index
    %92 = vector.load %arg2[%91, %c0_45] : memref<16x128xf32, #tpu.memory_space<vmem>>, vector<1x128xf32>
    %93 = vector.shape_cast %92 : vector<1x128xf32> to vector<1x128xf32>
    %94 = vector.broadcast %93 : vector<1x128xf32> to vector<16x128xf32>
    %95 = vector.shape_cast %0 : vector<16x128xf32> to vector<1x16x128xf32>
    %96 = arith.index_cast %c9_i32 : i32 to index
    %c0_46 = arith.constant 0 : index
    %c0_47 = arith.constant 0 : index
    %97 = vector.load %arg3[%96, %c0_46, %c0_47] : memref<16x16x256xf32, #tpu.memory_space<vmem>>, vector<1x16x128xf32>
    tpu.vector_store %arg3[%96, %c0_46, %c0_47], %95 {strides = array<i32>} : memref<16x16x256xf32, #tpu.memory_space<vmem>>, vector<1x16x128xf32>,
    %98 = vector.shape_cast %94 : vector<16x128xf32> to vector<1x16x128xf32>
    %99 = arith.index_cast %c9_i32 : i32 to index
    %c0_48 = arith.constant 0 : index
    %c128_49 = arith.constant 128 : index
    %100 = vector.load %arg3[%99, %c0_48, %c128_49] : memref<16x16x256xf32, #tpu.memory_space<vmem>>, vector<1x16x128xf32>
    tpu.vector_store %arg3[%99, %c0_48, %c128_49], %98 {strides = array<i32>} : memref<16x16x256xf32, #tpu.memory_space<vmem>>, vector<1x16x128xf32>,
    %c10_i32 = arith.constant 10 : i32
    %101 = arith.index_cast %c10_i32 : i32 to index
    %c0_50 = arith.constant 0 : index
    %102 = vector.load %arg2[%101, %c0_50] : memref<16x128xf32, #tpu.memory_space<vmem>>, vector<1x128xf32>
    %103 = vector.shape_cast %102 : vector<1x128xf32> to vector<1x128xf32>
    %104 = vector.broadcast %103 : vector<1x128xf32> to vector<16x128xf32>
    %105 = vector.shape_cast %0 : vector<16x128xf32> to vector<1x16x128xf32>
    %106 = arith.index_cast %c10_i32 : i32 to index
    %c0_51 = arith.constant 0 : index
    %c0_52 = arith.constant 0 : index
    %107 = vector.load %arg3[%106, %c0_51, %c0_52] : memref<16x16x256xf32, #tpu.memory_space<vmem>>, vector<1x16x128xf32>
    tpu.vector_store %arg3[%106, %c0_51, %c0_52], %105 {strides = array<i32>} : memref<16x16x256xf32, #tpu.memory_space<vmem>>, vector<1x16x128xf32>,
    %108 = vector.shape_cast %104 : vector<16x128xf32> to vector<1x16x128xf32>
    %109 = arith.index_cast %c10_i32 : i32 to index
    %c0_53 = arith.constant 0 : index
    %c128_54 = arith.constant 128 : index
    %110 = vector.load %arg3[%109, %c0_53, %c128_54] : memref<16x16x256xf32, #tpu.memory_space<vmem>>, vector<1x16x128xf32>
    tpu.vector_store %arg3[%109, %c0_53, %c128_54], %108 {strides = array<i32>} : memref<16x16x256xf32, #tpu.memory_space<vmem>>, vector<1x16x128xf32>,
    %c11_i32 = arith.constant 11 : i32
    %111 = arith.index_cast %c11_i32 : i32 to index
    %c0_55 = arith.constant 0 : index
    %112 = vector.load %arg2[%111, %c0_55] : memref<16x128xf32, #tpu.memory_space<vmem>>, vector<1x128xf32>
    %113 = vector.shape_cast %112 : vector<1x128xf32> to vector<1x128xf32>
    %114 = vector.broadcast %113 : vector<1x128xf32> to vector<16x128xf32>
    %115 = vector.shape_cast %0 : vector<16x128xf32> to vector<1x16x128xf32>
    %116 = arith.index_cast %c11_i32 : i32 to index
    %c0_56 = arith.constant 0 : index
    %c0_57 = arith.constant 0 : index
    %117 = vector.load %arg3[%116, %c0_56, %c0_57] : memref<16x16x256xf32, #tpu.memory_space<vmem>>, vector<1x16x128xf32>
    tpu.vector_store %arg3[%116, %c0_56, %c0_57], %115 {strides = array<i32>} : memref<16x16x256xf32, #tpu.memory_space<vmem>>, vector<1x16x128xf32>,
    %118 = vector.shape_cast %114 : vector<16x128xf32> to vector<1x16x128xf32>
    %119 = arith.index_cast %c11_i32 : i32 to index
    %c0_58 = arith.constant 0 : index
    %c128_59 = arith.constant 128 : index
    %120 = vector.load %arg3[%119, %c0_58, %c128_59] : memref<16x16x256xf32, #tpu.memory_space<vmem>>, vector<1x16x128xf32>
    tpu.vector_store %arg3[%119, %c0_58, %c128_59], %118 {strides = array<i32>} : memref<16x16x256xf32, #tpu.memory_space<vmem>>, vector<1x16x128xf32>,
    %c12_i32 = arith.constant 12 : i32
    %121 = arith.index_cast %c12_i32 : i32 to index
    %c0_60 = arith.constant 0 : index
    %122 = vector.load %arg2[%121, %c0_60] : memref<16x128xf32, #tpu.memory_space<vmem>>, vector<1x128xf32>
    %123 = vector.shape_cast %122 : vector<1x128xf32> to vector<1x128xf32>
    %124 = vector.broadcast %123 : vector<1x128xf32> to vector<16x128xf32>
    %125 = vector.shape_cast %0 : vector<16x128xf32> to vector<1x16x128xf32>
    %126 = arith.index_cast %c12_i32 : i32 to index
    %c0_61 = arith.constant 0 : index
    %c0_62 = arith.constant 0 : index
    %127 = vector.load %arg3[%126, %c0_61, %c0_62] : memref<16x16x256xf32, #tpu.memory_space<vmem>>, vector<1x16x128xf32>
    tpu.vector_store %arg3[%126, %c0_61, %c0_62], %125 {strides = array<i32>} : memref<16x16x256xf32, #tpu.memory_space<vmem>>, vector<1x16x128xf32>,
    %128 = vector.shape_cast %124 : vector<16x128xf32> to vector<1x16x128xf32>
    %129 = arith.index_cast %c12_i32 : i32 to index
    %c0_63 = arith.constant 0 : index
    %c128_64 = arith.constant 128 : index
    %130 = vector.load %arg3[%129, %c0_63, %c128_64] : memref<16x16x256xf32, #tpu.memory_space<vmem>>, vector<1x16x128xf32>
    tpu.vector_store %arg3[%129, %c0_63, %c128_64], %128 {strides = array<i32>} : memref<16x16x256xf32, #tpu.memory_space<vmem>>, vector<1x16x128xf32>,
    %c13_i32 = arith.constant 13 : i32
    %131 = arith.index_cast %c13_i32 : i32 to index
    %c0_65 = arith.constant 0 : index
    %132 = vector.load %arg2[%131, %c0_65] : memref<16x128xf32, #tpu.memory_space<vmem>>, vector<1x128xf32>
    %133 = vector.shape_cast %132 : vector<1x128xf32> to vector<1x128xf32>
    %134 = vector.broadcast %133 : vector<1x128xf32> to vector<16x128xf32>
    %135 = vector.shape_cast %0 : vector<16x128xf32> to vector<1x16x128xf32>
    %136 = arith.index_cast %c13_i32 : i32 to index
    %c0_66 = arith.constant 0 : index
    %c0_67 = arith.constant 0 : index
    %137 = vector.load %arg3[%136, %c0_66, %c0_67] : memref<16x16x256xf32, #tpu.memory_space<vmem>>, vector<1x16x128xf32>
    tpu.vector_store %arg3[%136, %c0_66, %c0_67], %135 {strides = array<i32>} : memref<16x16x256xf32, #tpu.memory_space<vmem>>, vector<1x16x128xf32>,
    %138 = vector.shape_cast %134 : vector<16x128xf32> to vector<1x16x128xf32>
    %139 = arith.index_cast %c13_i32 : i32 to index
    %c0_68 = arith.constant 0 : index
    %c128_69 = arith.constant 128 : index
    %140 = vector.load %arg3[%139, %c0_68, %c128_69] : memref<16x16x256xf32, #tpu.memory_space<vmem>>, vector<1x16x128xf32>
    tpu.vector_store %arg3[%139, %c0_68, %c128_69], %138 {strides = array<i32>} : memref<16x16x256xf32, #tpu.memory_space<vmem>>, vector<1x16x128xf32>,
    %c14_i32 = arith.constant 14 : i32
    %141 = arith.index_cast %c14_i32 : i32 to index
    %c0_70 = arith.constant 0 : index
    %142 = vector.load %arg2[%141, %c0_70] : memref<16x128xf32, #tpu.memory_space<vmem>>, vector<1x128xf32>
    %143 = vector.shape_cast %142 : vector<1x128xf32> to vector<1x128xf32>
    %144 = vector.broadcast %143 : vector<1x128xf32> to vector<16x128xf32>
    %145 = vector.shape_cast %0 : vector<16x128xf32> to vector<1x16x128xf32>
    %146 = arith.index_cast %c14_i32 : i32 to index
    %c0_71 = arith.constant 0 : index
    %c0_72 = arith.constant 0 : index
    %147 = vector.load %arg3[%146, %c0_71, %c0_72] : memref<16x16x256xf32, #tpu.memory_space<vmem>>, vector<1x16x128xf32>
    tpu.vector_store %arg3[%146, %c0_71, %c0_72], %145 {strides = array<i32>} : memref<16x16x256xf32, #tpu.memory_space<vmem>>, vector<1x16x128xf32>,
    %148 = vector.shape_cast %144 : vector<16x128xf32> to vector<1x16x128xf32>
    %149 = arith.index_cast %c14_i32 : i32 to index
    %c0_73 = arith.constant 0 : index
    %c128_74 = arith.constant 128 : index
    %150 = vector.load %arg3[%149, %c0_73, %c128_74] : memref<16x16x256xf32, #tpu.memory_space<vmem>>, vector<1x16x128xf32>
    tpu.vector_store %arg3[%149, %c0_73, %c128_74], %148 {strides = array<i32>} : memref<16x16x256xf32, #tpu.memory_space<vmem>>, vector<1x16x128xf32>,
    %c15_i32 = arith.constant 15 : i32
    %151 = arith.index_cast %c15_i32 : i32 to index
    %c0_75 = arith.constant 0 : index
    %152 = vector.load %arg2[%151, %c0_75] : memref<16x128xf32, #tpu.memory_space<vmem>>, vector<1x128xf32>
    %153 = vector.shape_cast %152 : vector<1x128xf32> to vector<1x128xf32>
    %154 = vector.broadcast %153 : vector<1x128xf32> to vector<16x128xf32>
    %155 = vector.shape_cast %0 : vector<16x128xf32> to vector<1x16x128xf32>
    %156 = arith.index_cast %c15_i32 : i32 to index
    %c0_76 = arith.constant 0 : index
    %c0_77 = arith.constant 0 : index
    %157 = vector.load %arg3[%156, %c0_76, %c0_77] : memref<16x16x256xf32, #tpu.memory_space<vmem>>, vector<1x16x128xf32>
    tpu.vector_store %arg3[%156, %c0_76, %c0_77], %155 {strides = array<i32>} : memref<16x16x256xf32, #tpu.memory_space<vmem>>, vector<1x16x128xf32>,
    %158 = vector.shape_cast %154 : vector<16x128xf32> to vector<1x16x128xf32>
    %159 = arith.index_cast %c15_i32 : i32 to index
    %c0_78 = arith.constant 0 : index
    %c128_79 = arith.constant 128 : index
    %160 = vector.load %arg3[%159, %c0_78, %c128_79] : memref<16x16x256xf32, #tpu.memory_space<vmem>>, vector<1x16x128xf32>
    tpu.vector_store %arg3[%159, %c0_78, %c128_79], %158 {strides = array<i32>} : memref<16x16x256xf32, #tpu.memory_space<vmem>>, vector<1x16x128xf32>,
    %c16_i32 = arith.constant 16 : i32
    return
  }
  func.func @transform_0(%arg0: i32) -> (i32, i32) {
    %c0_i32 = arith.constant 0 : i32
    %c0_i32_0 = arith.constant 0 : i32
    %c0_i32_1 = arith.constant 0 : i32
    return %c0_i32, %c0_i32_0 : i32, i32
  }
  func.func @transform_1(%arg0: i32) -> (i32, i32) {
    %c0_i32 = arith.constant 0 : i32
    %c0_i32_0 = arith.constant 0 : i32
    return %arg0, %c0_i32 : i32, i32
  }
  func.func @transform_2(%arg0: i32) -> (i32, i32, i32) {
    %c0_i32 = arith.constant 0 : i32
    %c0_i32_0 = arith.constant 0 : i32
    %c0_i32_1 = arith.constant 0 : i32
    return %arg0, %c0_i32, %c0_i32_0 : i32, i32, i32
  }
}

</mosaic_0001>

<bundles_post_ra>
// kernel: tpu_custom_call.1
= control target key start
LH: loop header
LB: loop body
LE: loop exit
PB: predicated region body
PF: predicated region fallthrough
CT: control target
= control target key end

     0   :  { %7 = vsyncpa [#allocation3], 0  ;;  %s382_s0 = inlined_call_operand.hbm [shape: f32[16,128], index: 0, kind: input, shape index: {}]   ;;  %s383_s1 = inlined_call_operand.hbm [shape: f32[16,128], index: 1, kind: input, shape index: {}]   ;;  %s384_s2 = inlined_call_operand.hbm [shape: f32[16,16,256], index: 2, kind: output, shape index: {}]  }
   0x1   :  { %8 = vsyncpa [#allocation6], 0 }
   0x2   :  { %9 = vsyncpa [#allocation4], 0  ;;  %s314_s9 = smov [#allocation2]   ;;  %s242_s13 = scalar_lea.hbm %s382_s0, 256 }
   0x3   :  { %s15_s10 = sshll.u32 %s314_s9, 4  ;;  %p243_p0 = scmp.ne.s32.totalorder %s382_s0, %s242_s13  ;;  %s16_s10 = int_to_ptr.vmem [resolvable:$true] %s15_s10 }
   0x4   :  { %p246_p1 = scmp.lt.u32.totalorder %s242_s13, %s382_s0 }
   0x6   :  { %p248_p2 = pnand %p246_p1, %p243_p0 }
   0x8   :  { %251 = shalt.err (!%p248_p2)
}
   0x9   :  { %s252_s18 = scalar_lea.vmem %s16_s10, 256  ;;  %p257_p4 = scmp.lt.s32.totalorder %s16_s10, %s16_s10 }
   0xa   :  { %p253_p3 = scmp.ne.s32.totalorder %s16_s10, %s252_s18  ;;  %p258_p5 = scmp.lt.s32.totalorder %s252_s18, %s252_s18 }
   0xc   :  { %p259_p6 = por %p258_p5, %p257_p4 }
   0xe   :  { %p260_p7 = pnand %p259_p6, %p253_p3 }
  0x10   :  { %263 = shalt.err (!%p260_p7)
}
  0x11   :  { %s315_s19 = smov 128   ;;  %s316_s20 = smov 8  }
  0x12   :  { %21 = dma.hbm_to_vmem [thread:$0]  %s382_s0, 256, %s16_s10, [#allocation3], %s315_s19, %s315_s19, %s316_s20  }
  0x13   :  { %s317_s23 = smov [#allocation5]   ;;  %s264_s27 = scalar_lea.hbm %s383_s1, 256 }
  0x14   :  { %s27_s24 = sshll.u32 %s317_s23, 4  ;;  %p265_p8 = scmp.ne.s32.totalorder %s383_s1, %s264_s27  ;;  %s28_s24 = int_to_ptr.vmem [resolvable:$true] %s27_s24 }
  0x15   :  { %p268_p9 = scmp.lt.u32.totalorder %s264_s27, %s383_s1 }
  0x17   :  { %p270_p10 = pnand %p268_p9, %p265_p8 }
  0x19   :  { %273 = shalt.err (!%p270_p10)
}
  0x1a   :  { %s274_s4 = scalar_lea.vmem %s28_s24, 256  ;;  %p279_p12 = scmp.lt.s32.totalorder %s28_s24, %s28_s24 }
  0x1b   :  { %p275_p11 = scmp.ne.s32.totalorder %s28_s24, %s274_s4  ;;  %p280_p13 = scmp.lt.s32.totalorder %s274_s4, %s274_s4 }
  0x1d   :  { %p281_p0 = por %p280_p13, %p279_p12 }
  0x1f   :  { %p282_p1 = pnand %p281_p0, %p275_p11 }
  0x21   :  { %285 = shalt.err (!%p282_p1)
}
  0x22   :  { %33 = dma.hbm_to_vmem [thread:$0]  %s383_s1, 256, %s28_s24, [#allocation6], %s315_s19, %s315_s19, %s316_s20  }
  0x23   :  { %308 = dma.done.wait [#allocation3], 256  }
  0x24   :  { %309 = vsyncadd [#allocation3], 4294967040 }
  0x25   :  { %310 = dma.done.wait [#allocation6], 256  }
  0x26   :  { %311 = vsyncadd [#allocation6], 4294967040  ;;  %v40_v0 = vld [vmem:[#allocation2] sm:$0xff]  ;;  %v41_v1 = vld [vmem:[#allocation2 + $0x8] sm:$0xff]  ;;  %s318_s6 = smov [#allocation7]  }
  0x27   :  { %v219_v2 = vld [vmem:[#allocation5] ss:$0 sm:$0xff]  ;;  %s360_s7 = sshll.u32 %s318_s6, 4  ;;  %43 = vst [vmem:[#allocation7] sm:$0xff] %v40_v0  ;;  %53 = vst [vmem:[#allocation7 + $0x20] sm:$0xff] %v40_v0  ;;  %s363_s7 = int_to_ptr.vmem [resolvable:$true] %s360_s7 }
  0x28   :  { %63 = vst [vmem:[#allocation7 + $0x40] sm:$0xff] %v40_v0  ;;  %73 = vst [vmem:[#allocation7 + $0x60] sm:$0xff] %v40_v0  ;;  %v220_v3 = vld [vmem:[#allocation5 + $0x1] ss:$0 sm:$0xff]  ;;  %v221_v4 = vld [vmem:[#allocation5 + $0x2] ss:$0 sm:$0xff]  ;;  %p291_p3 = scmp.lt.s32.totalorder %s363_s7, %s363_s7 }
  0x29   :  { %83 = vst [vmem:[#allocation7 + $0x80] sm:$0xff] %v40_v0  ;;  %93 = vst [vmem:[#allocation7 + $0xa0] sm:$0xff] %v40_v0  ;;  %v222_v5 = vld [vmem:[#allocation5 + $0x3] ss:$0 sm:$0xff]  ;;  %v223_v6 = vld [vmem:[#allocation5 + $0x4] ss:$0 sm:$0xff] }
  0x2a   :  { %103 = vst [vmem:[#allocation7 + $0xc0] sm:$0xff] %v40_v0  ;;  %113 = vst [vmem:[#allocation7 + $0xe0] sm:$0xff] %v40_v0  ;;  %v224_v7 = vld [vmem:[#allocation5 + $0x5] ss:$0 sm:$0xff]  ;;  %v225_v8 = vld [vmem:[#allocation5 + $0x6] ss:$0 sm:$0xff] }
  0x2b   :  { %123 = vst [vmem:[#allocation7 + $0x100] sm:$0xff] %v40_v0  ;;  %133 = vst [vmem:[#allocation7 + $0x120] sm:$0xff] %v40_v0  ;;  %v226_v9 = vld [vmem:[#allocation5 + $0x7] ss:$0 sm:$0xff]  ;;  %v227_v10 = vld [vmem:[#allocation5 + $0x8] ss:$0 sm:$0xff] }
  0x2c   :  { %143 = vst [vmem:[#allocation7 + $0x140] sm:$0xff] %v40_v0  ;;  %153 = vst [vmem:[#allocation7 + $0x160] sm:$0xff] %v40_v0  ;;  %v228_v11 = vld [vmem:[#allocation5 + $0x9] ss:$0 sm:$0xff]  ;;  %v229_v12 = vld [vmem:[#allocation5 + $0xa] ss:$0 sm:$0xff] }
  0x2d   :  { %163 = vst [vmem:[#allocation7 + $0x180] sm:$0xff] %v40_v0  ;;  %173 = vst [vmem:[#allocation7 + $0x1a0] sm:$0xff] %v40_v0  ;;  %v230_v13 = vld [vmem:[#allocation5 + $0xb] ss:$0 sm:$0xff]  ;;  %v231_v14 = vld [vmem:[#allocation5 + $0xc] ss:$0 sm:$0xff] }
  0x2e   :  { %183 = vst [vmem:[#allocation7 + $0x1c0] sm:$0xff] %v40_v0  ;;  %193 = vst [vmem:[#allocation7 + $0x1e0] sm:$0xff] %v40_v0  ;;  %v232_v15 = vld [vmem:[#allocation5 + $0xd] ss:$0 sm:$0xff]  ;;  %v233_v16 = vld [vmem:[#allocation5 + $0xe] ss:$0 sm:$0xff] }
  0x2f   :  { %44 = vst [vmem:[#allocation7 + $0x10] sm:$0xff] %v41_v1  ;;  %54 = vst [vmem:[#allocation7 + $0x30] sm:$0xff] %v41_v1  ;;  %v234_v17 = vld [vmem:[#allocation5 + $0xf] ss:$0 sm:$0xff]  ;;  %s286_s1 = scalar_lea.vmem %s363_s7, 8192 }
  0x30   :  { %64 = vst [vmem:[#allocation7 + $0x50] sm:$0xff] %v41_v1  ;;  %74 = vst [vmem:[#allocation7 + $0x70] sm:$0xff] %v41_v1  ;;  %p287_p2 = scmp.ne.s32.totalorder %s363_s7, %s286_s1  ;;  %p292_p4 = scmp.lt.s32.totalorder %s286_s1, %s286_s1 }
  0x31   :  { %84 = vst [vmem:[#allocation7 + $0x90] sm:$0xff] %v41_v1  ;;  %94 = vst [vmem:[#allocation7 + $0xb0] sm:$0xff] %v41_v1 }
  0x32   :  { %104 = vst [vmem:[#allocation7 + $0xd0] sm:$0xff] %v41_v1  ;;  %114 = vst [vmem:[#allocation7 + $0xf0] sm:$0xff] %v41_v1  ;;  %p293_p5 = por %p292_p4, %p291_p3 }
  0x33   :  { %124 = vst [vmem:[#allocation7 + $0x110] sm:$0xff] %v41_v1  ;;  %134 = vst [vmem:[#allocation7 + $0x130] sm:$0xff] %v41_v1 }
  0x34   :  { %144 = vst [vmem:[#allocation7 + $0x150] sm:$0xff] %v41_v1  ;;  %154 = vst [vmem:[#allocation7 + $0x170] sm:$0xff] %v41_v1  ;;  %p294_p6 = pnand %p293_p5, %p287_p2 }
  0x35   :  { %164 = vst [vmem:[#allocation7 + $0x190] sm:$0xff] %v41_v1  ;;  %174 = vst [vmem:[#allocation7 + $0x1b0] sm:$0xff] %v41_v1 }
  0x36   :  { %184 = vst [vmem:[#allocation7 + $0x1d0] sm:$0xff] %v41_v1  ;;  %194 = vst [vmem:[#allocation7 + $0x1f0] sm:$0xff] %v41_v1 }
  0x37   :  { %49 = vst [vmem:[#allocation7 + $0x8] sm:$0xff] %v219_v2  ;;  %50 = vst [vmem:[#allocation7 + $0x18] sm:$0xff] %v219_v2 }
  0x38   :  { %59 = vst [vmem:[#allocation7 + $0x28] sm:$0xff] %v220_v3  ;;  %60 = vst [vmem:[#allocation7 + $0x38] sm:$0xff] %v220_v3 }
  0x39   :  { %69 = vst [vmem:[#allocation7 + $0x48] sm:$0xff] %v221_v4  ;;  %70 = vst [vmem:[#allocation7 + $0x58] sm:$0xff] %v221_v4 }
  0x3a   :  { %79 = vst [vmem:[#allocation7 + $0x68] sm:$0xff] %v222_v5  ;;  %80 = vst [vmem:[#allocation7 + $0x78] sm:$0xff] %v222_v5 }
  0x3b   :  { %89 = vst [vmem:[#allocation7 + $0x88] sm:$0xff] %v223_v6  ;;  %90 = vst [vmem:[#allocation7 + $0x98] sm:$0xff] %v223_v6 }
  0x3c   :  { %99 = vst [vmem:[#allocation7 + $0xa8] sm:$0xff] %v224_v7  ;;  %100 = vst [vmem:[#allocation7 + $0xb8] sm:$0xff] %v224_v7 }
  0x3d   :  { %109 = vst [vmem:[#allocation7 + $0xc8] sm:$0xff] %v225_v8  ;;  %110 = vst [vmem:[#allocation7 + $0xd8] sm:$0xff] %v225_v8 }
  0x3e   :  { %119 = vst [vmem:[#allocation7 + $0xe8] sm:$0xff] %v226_v9  ;;  %120 = vst [vmem:[#allocation7 + $0xf8] sm:$0xff] %v226_v9 }
  0x3f   :  { %129 = vst [vmem:[#allocation7 + $0x108] sm:$0xff] %v227_v10  ;;  %130 = vst [vmem:[#allocation7 + $0x118] sm:$0xff] %v227_v10 }
  0x40   :  { %139 = vst [vmem:[#allocation7 + $0x128] sm:$0xff] %v228_v11  ;;  %140 = vst [vmem:[#allocation7 + $0x138] sm:$0xff] %v228_v11 }
  0x41   :  { %149 = vst [vmem:[#allocation7 + $0x148] sm:$0xff] %v229_v12  ;;  %150 = vst [vmem:[#allocation7 + $0x158] sm:$0xff] %v229_v12 }
  0x42   :  { %159 = vst [vmem:[#allocation7 + $0x168] sm:$0xff] %v230_v13  ;;  %160 = vst [vmem:[#allocation7 + $0x178] sm:$0xff] %v230_v13 }
  0x43   :  { %169 = vst [vmem:[#allocation7 + $0x188] sm:$0xff] %v231_v14  ;;  %170 = vst [vmem:[#allocation7 + $0x198] sm:$0xff] %v231_v14 }
  0x44   :  { %179 = vst [vmem:[#allocation7 + $0x1a8] sm:$0xff] %v232_v15  ;;  %180 = vst [vmem:[#allocation7 + $0x1b8] sm:$0xff] %v232_v15 }
  0x45   :  { %189 = vst [vmem:[#allocation7 + $0x1c8] sm:$0xff] %v233_v16  ;;  %190 = vst [vmem:[#allocation7 + $0x1d8] sm:$0xff] %v233_v16 }
  0x46   :  { %199 = vst [vmem:[#allocation7 + $0x1e8] sm:$0xff] %v234_v17  ;;  %200 = vst [vmem:[#allocation7 + $0x1f8] sm:$0xff] %v234_v17 }
  0x47   :  { %297 = shalt.err (!%p294_p6)
}
  0x48   :  { %s298_s10 = scalar_lea.hbm %s384_s2, 8192 }
  0x49   :  { %p299_p7 = scmp.ne.s32.totalorder %s384_s2, %s298_s10  ;;  %p302_p8 = scmp.lt.u32.totalorder %s298_s10, %s384_s2 }
  0x4b   :  { %p304_p9 = pnand %p302_p8, %p299_p7 }
  0x4d   :  { %307 = shalt.err (!%p304_p9)
}
  0x4e   :  { %s319_s15 = smov 256   ;;  %s320_s16 = smov 16  }
  0x4f   :  { %212 = dma.vmem_to_hbm [thread:$0]  %s363_s7, 8192, %s384_s2, [#allocation4], %s319_s15, %s319_s15, %s320_s16  }
  0x50   :  { %312 = dma.done.wait [#allocation4], 8192  }
  0x51   :  { %313 = vsyncadd [#allocation4], 4294959104 }
  0x52   :  { %216 = vsyncpa [#allocation3], 1 }
  0x53   :  { %217 = vsyncpa [#allocation6], 1 }
  0x54   :  { %218 = vsyncpa [#allocation4], 1 }

</bundles_post_ra>
